<compile_context>
chip_gen: v6e
topology: v6e:2x2x1
jax: 0.10.0
libtpu: 0.0.40
codegen_flags: <defaults>
</compile_context>

<pallas_src>
import functools

import jax
import jax.numpy as jnp
from jax import lax
from jax.experimental import pallas as pl
from jax.experimental.pallas import tpu as pltpu

LANES = 128
SUBLANES = 8
DEFAULT_BLOCK_ROWS = 2048  # 2048 x 128 x 4 B = 1 MiB per f32 input block


def _check_loss_kernel(g_ref, y_ref, o_ref, *, tau, total_rows, block_rows,
                       needs_mask):
    j = pl.program_id(1)

    @pl.when(j == 0)
    def _init():
        o_ref[...] = jnp.zeros_like(o_ref)

    # Cast to f32 inside the kernel (VPU-cheap, keeps HBM traffic at native
    # dtype width; v5e has no bf16 VALU so the math must be f32 anyway).
    e = y_ref[...].astype(jnp.float32) - g_ref[...].astype(jnp.float32)
    u = jnp.maximum(tau * e, (tau - 1.0) * e)

    if needs_mask:
        # Logical row-block index of this step (may point past the array for
        # the clamped overhang block of the last shard -- fully masked here).
        rb = pl.program_id(0) * pl.num_programs(1) + j
        row_ids = rb * block_rows + lax.broadcasted_iota(
            jnp.int32, (block_rows, LANES), 0)
        u = jnp.where(row_ids < total_rows, u, 0.0)

    # Sublane-friendly partial reduce: (block_rows, 128) -> (K, 8, 128), sum
    # over the leading axis (plain vreg adds on the VPU) and accumulate into
    # the resident (8, 128) output block.  The cross-lane reduce happens
    # exactly once, in the wrapper.
    o_ref[...] += u.reshape(block_rows // SUBLANES, SUBLANES, LANES).sum(axis=0)


def check_loss_pallas(g, y, tau: float = 0.5):
    assert g.shape == y.shape, "pred and target must have the same shape"
    n = int(g.size)
    if n == 0:
        # torch.mean over an empty tensor is NaN.
        return jnp.float32(float("nan"))

    g_flat = g.reshape(-1)
    y_flat = y.reshape(-1)

    rows_needed = pl.cdiv(n, LANES)
    if rows_needed <= DEFAULT_BLOCK_ROWS:
        # Single-block case: round rows up to a multiple of 8 so the block
        # shape satisfies the (8,128) tiling rule.  Pad copy is <= ~1 MiB.
        block_rows = ((rows_needed + SUBLANES - 1) // SUBLANES) * SUBLANES
        padded_rows = block_rows
    else:
        # Streaming case: only the <=127-element tail (if any) is padded so a
        # lane-dense 2D view exists; n % 128 == 0 stays copy-free.
        block_rows = DEFAULT_BLOCK_ROWS
        padded_rows = rows_needed

    pad = padded_rows * LANES - n
    if pad:
        # Zero padding is exact: max(tau*0, (tau-1)*0) == 0, and the mean
        # still divides by the true element count n.
        g_flat = jnp.pad(g_flat, (0, pad))
        y_flat = jnp.pad(y_flat, (0, pad))

    rows = padded_rows
    g2 = g_flat.reshape(rows, LANES)
    y2 = y_flat.reshape(rows, LANES)

    num_blocks = pl.cdiv(rows, block_rows)

    # Outer "parallel" axis exposes the second TensorCore on v7x (memory
    # bound -> ~2x there); harmless on single-core chips.
    shards = 2 if num_blocks >= 2 else 1
    bps = pl.cdiv(num_blocks, shards)  # blocks per shard

    # Mask only needed if the last block is partial or a shard has an
    # overhang (clamped, duplicated) block.  Static -> compiled out otherwise.
    needs_mask = (rows % block_rows != 0) or (num_blocks % shards != 0)

    def in_idx(i, j):
        # Clamp so the overhang block of the last shard stays in-bounds; the
        # kernel masks it out via its logical row index.
        rb = jnp.minimum(i * bps + j, num_blocks - 1)
        return (rb, 0)

    kernel = functools.partial(
        _check_loss_kernel,
        tau=float(tau),
        total_rows=rows,
        block_rows=block_rows,
        needs_mask=needs_mask,
    )

    partials = pl.pallas_call(
        kernel,
        out_shape=jax.ShapeDtypeStruct((shards * SUBLANES, LANES), jnp.float32),
        grid_spec=pltpu.PrefetchScalarGridSpec(
            num_scalar_prefetch=0,
            grid=(shards, bps),
            in_specs=[
                pl.BlockSpec((block_rows, LANES), in_idx),
                pl.BlockSpec((block_rows, LANES), in_idx),
            ],
            out_specs=pl.BlockSpec((SUBLANES, LANES), lambda i, j: (i, 0)),
        ),
        compiler_params=pltpu.CompilerParams(
            dimension_semantics=("parallel", "arbitrary"),
        ),
    )(g2, y2)

    # Single cross-lane reduction + divide on a tiny (shards*8, 128) array.
    return jnp.sum(partials) / jnp.float32(n)


def check_loss_ref(g, y, tau: float = 0.5):
    e = y.astype(jnp.float32) - g.astype(jnp.float32)
    return jnp.mean(jnp.maximum(tau * e, (tau - 1.0) * e))


if __name__ == "__main__":
    key = jax.random.PRNGKey(0)

    # Primary small case consistent with an NCHW prediction/target pair.
    k1, k2 = jax.random.split(key)
    shape = (2, 4, 16, 16)
    g = jax.random.normal(k1, shape, dtype=jnp.float32)
    y = jax.random.normal(k2, shape, dtype=jnp.float32)
    tau = 0.5
    loss = check_loss_pallas(g, y, tau)
    jax.block_until_ready(loss)
    ref = check_loss_ref(g, y, tau)
    assert jnp.allclose(loss, ref, atol=1e-5, rtol=1e-5), (loss, ref)

    # Tail-padding path: size not a multiple of 128, asymmetric tau.
    k3, k4 = jax.random.split(k1)
    g_odd = jax.random.normal(k3, (3, 5, 7), dtype=jnp.float32)
    y_odd = jax.random.normal(k4, (3, 5, 7), dtype=jnp.float32)
    loss_odd = check_loss_pallas(g_odd, y_odd, 0.9)
    ref_odd = check_loss_ref(g_odd, y_odd, 0.9)
    assert jnp.allclose(loss_odd, ref_odd, atol=1e-5, rtol=1e-5), (loss_odd, ref_odd)

    # Multi-block / two-shard path, evenly divisible (mask compiled out).
    k5, k6 = jax.random.split(k2)
    g_big = jax.random.normal(k5, (5, 4, 128, 128), dtype=jnp.float32)
    y_big = jax.random.normal(k6, (5, 4, 128, 128), dtype=jnp.float32)
    loss_big = check_loss_pallas(g_big, y_big, 0.25)
    ref_big = check_loss_ref(g_big, y_big, 0.25)
    assert jnp.allclose(loss_big, ref_big, atol=1e-5, rtol=1e-5), (loss_big, ref_big)

    # Multi-block path with a partial last block AND a tail (mask exercised).
    k7, k8 = jax.random.split(k5)
    g_ragged = jax.random.normal(k7, (2, 3, 212, 212), dtype=jnp.float32)
    y_ragged = jax.random.normal(k8, (2, 3, 212, 212), dtype=jnp.float32)
    loss_ragged = check_loss_pallas(g_ragged, y_ragged, 0.7)
    ref_ragged = check_loss_ref(g_ragged, y_ragged, 0.7)
    assert jnp.allclose(loss_ragged, ref_ragged, atol=1e-5, rtol=1e-5), (
        loss_ragged, ref_ragged)

    print("KERNEL_OK")
</pallas_src>

<mosaic_0001>
module attributes {stable_mosaic.version = 11 : i64} {
  func.func @_check_loss_kernel(%arg0: i32, %arg1: i32, %arg2: memref<16x128xf32, #tpu.memory_space<vmem>>, %arg3: memref<16x128xf32, #tpu.memory_space<vmem>>, %arg4: memref<8x128xf32, #tpu.memory_space<vmem>>) attributes {dimension_semantics = [#tpu.dimension_semantics<parallel>, #tpu.dimension_semantics<arbitrary>], iteration_bounds = array<i64: 1, 1>, scalar_prefetch = 0 : i64, scratch_operands = 0 : i64, tpu.core_type = #tpu.core_type<tc>, window_params = [{transform_indices = @transform_0, window_bounds = array<i64: 16, 128>}, {transform_indices = @transform_1, window_bounds = array<i64: 16, 128>}, {transform_indices = @transform_2, window_bounds = array<i64: 8, 128>}]} {
    %c0_i32 = arith.constant 0 : i32
    %0 = arith.cmpi eq, %arg1, %c0_i32 : i32
    %1 = arith.extui %0 : i1 to i32
    %c0_i32_0 = arith.constant 0 : i32
    %2 = arith.cmpi ne, %1, %c0_i32_0 : i32
    scf.if %2 {
      %cst_10 = arith.constant 0.000000e+00 : f32
      %16 = vector.broadcast %cst_10 : f32 to vector<8x128xf32>
      %c0_11 = arith.constant 0 : index
      %c0_12 = arith.constant 0 : index
      %17 = vector.load %arg4[%c0_11, %c0_12] : memref<8x128xf32, #tpu.memory_space<vmem>>, vector<8x128xf32>
      tpu.vector_store %arg4[%c0_11, %c0_12], %16 {strides = array<i32>} : memref<8x128xf32, #tpu.memory_space<vmem>>, vector<8x128xf32>,
    } else {
    }
    %c0 = arith.constant 0 : index
    %c0_1 = arith.constant 0 : index
    %3 = vector.load %arg3[%c0, %c0_1] : memref<16x128xf32, #tpu.memory_space<vmem>>, vector<16x128xf32>
    %c0_2 = arith.constant 0 : index
    %c0_3 = arith.constant 0 : index
    %4 = vector.load %arg2[%c0_2, %c0_3] : memref<16x128xf32, #tpu.memory_space<vmem>>, vector<16x128xf32>
    %5 = arith.subf %3, %4 : vector<16x128xf32>
    %cst = arith.constant 5.000000e-01 : f32
    %6 = vector.broadcast %cst : f32 to vector<16x128xf32>
    %7 = arith.mulf %6, %5 : vector<16x128xf32>
    %cst_4 = arith.constant -5.000000e-01 : f32
    %8 = vector.broadcast %cst_4 : f32 to vector<16x128xf32>
    %9 = arith.mulf %8, %5 : vector<16x128xf32>
    %10 = arith.maximumf %7, %9 : vector<16x128xf32>
    %c0_5 = arith.constant 0 : index
    %c0_6 = arith.constant 0 : index
    %11 = vector.load %arg4[%c0_5, %c0_6] : memref<8x128xf32, #tpu.memory_space<vmem>>, vector<8x128xf32>
    %12 = vector.shape_cast %10 : vector<16x128xf32> to vector<2x8x128xf32>
    %cst_7 = arith.constant dense<0.000000e+00> : vector<8x128xf32>
    %13 = vector.multi_reduction <add>, %12, %cst_7 [0] : vector<2x8x128xf32> to vector<8x128xf32>
    %14 = arith.addf %11, %13 : vector<8x128xf32>
    %c0_8 = arith.constant 0 : index
    %c0_9 = arith.constant 0 : index
    %15 = vector.load %arg4[%c0_8, %c0_9] : memref<8x128xf32, #tpu.memory_space<vmem>>, vector<8x128xf32>
    tpu.vector_store %arg4[%c0_8, %c0_9], %14 {strides = array<i32>} : memref<8x128xf32, #tpu.memory_space<vmem>>, vector<8x128xf32>,
    return
  }
  func.func @transform_0(%arg0: i32, %arg1: i32) -> (i32, i32) {
    %c1_i32 = arith.constant 1 : i32
    %0 = arith.muli %arg0, %c1_i32 : i32
    %1 = arith.addi %0, %arg1 : i32
    %c0_i32 = arith.constant 0 : i32
    %2 = arith.minsi %1, %c0_i32 : i32
    %c0_i32_0 = arith.constant 0 : i32
    %c0_i32_1 = arith.constant 0 : i32
    return %2, %c0_i32_0 : i32, i32
  }
  func.func @transform_1(%arg0: i32, %arg1: i32) -> (i32, i32) {
    %c1_i32 = arith.constant 1 : i32
    %0 = arith.muli %arg0, %c1_i32 : i32
    %1 = arith.addi %0, %arg1 : i32
    %c0_i32 = arith.constant 0 : i32
    %2 = arith.minsi %1, %c0_i32 : i32
    %c0_i32_0 = arith.constant 0 : i32
    %c0_i32_1 = arith.constant 0 : i32
    return %2, %c0_i32_0 : i32, i32
  }
  func.func @transform_2(%arg0: i32, %arg1: i32) -> (i32, i32) {
    %c0_i32 = arith.constant 0 : i32
    %c0_i32_0 = arith.constant 0 : i32
    return %arg0, %c0_i32 : i32, i32
  }
}

</mosaic_0001>

<bundles_post_ra>
// kernel: tpu_custom_call.1
= control target key start
LH: loop header
LB: loop body
LE: loop exit
PB: predicated region body
PF: predicated region fallthrough
CT: control target
= control target key end

     0   :  { %7 = vsyncpa [#allocation3], 0  ;;  %s202_s0 = inlined_call_operand.hbm [shape: f32[16,128], index: 0, kind: input, shape index: {}]   ;;  %s203_s1 = inlined_call_operand.hbm [shape: f32[16,128], index: 1, kind: input, shape index: {}]   ;;  %s204_s2 = inlined_call_operand.hbm [shape: f32[8,128], index: 2, kind: output, shape index: {}]  }
   0x1   :  { %8 = vsyncpa [#allocation6], 0 }
   0x2   :  { %9 = vsyncpa [#allocation4], 0  ;;  %s173_s9 = smov [#allocation2]  }
   0x3   :  { %s21_s10 = sshll.u32 %s173_s9, 4  ;;  %s22_s10 = int_to_ptr.vmem [resolvable:$true] %s21_s10 }
   0x4   :  { %s115_s11 = scalar_lea.vmem %s22_s10, 256  ;;  %p120_p1 = scmp.lt.s32.totalorder %s22_s10, %s22_s10 }
   0x5   :  { %p116_p0 = scmp.ne.s32.totalorder %s22_s10, %s115_s11  ;;  %p121_p2 = scmp.lt.s32.totalorder %s115_s11, %s115_s11 }
   0x7   :  { %p122_p3 = por %p121_p2, %p120_p1 }
   0x9   :  { %p123_p4 = pnand %p122_p3, %p116_p0 }
   0xb   :  { %126 = shalt.err (!%p123_p4)
}
   0xc   :  { %s174_s12 = smov 128   ;;  %s175_s13 = smov 8  }
   0xd   :  { %27 = dma.hbm_to_vmem [thread:$0]  %s202_s0, 256, %s22_s10, [#allocation3], %s174_s12, %s174_s12, %s175_s13  }
   0xe   :  { %s176_s16 = smov [#allocation5]  }
   0xf   :  { %s39_s17 = sshll.u32 %s176_s16, 4  ;;  %s40_s17 = int_to_ptr.vmem [resolvable:$true] %s39_s17 }
  0x10   :  { %s135_s18 = scalar_lea.vmem %s40_s17, 256  ;;  %p140_p6 = scmp.lt.s32.totalorder %s40_s17, %s40_s17 }
  0x11   :  { %p136_p5 = scmp.ne.s32.totalorder %s40_s17, %s135_s18  ;;  %p141_p7 = scmp.lt.s32.totalorder %s135_s18, %s135_s18 }
  0x13   :  { %p142_p8 = por %p141_p7, %p140_p6 }
  0x15   :  { %p143_p9 = pnand %p142_p8, %p136_p5 }
  0x17   :  { %146 = shalt.err (!%p143_p9)
}
  0x18   :  { %45 = dma.hbm_to_vmem [thread:$0]  %s203_s1, 256, %s40_s17, [#allocation6], %s174_s12, %s174_s12, %s175_s13  }
  0x19   :  { %167 = dma.done.wait [#allocation3], 256  }
  0x1a   :  { %168 = vsyncadd [#allocation3], 4294967040 }
  0x1b   :  { %169 = dma.done.wait [#allocation6], 256  }
  0x1c   :  { %170 = vsyncadd [#allocation6], 4294967040  ;;  %v65_v0 = vld [vmem:[#allocation5] sm:$0xff]  ;;  %v66_v1 = vld [vmem:[#allocation5 + $0x8] sm:$0xff]  ;;  %s177_s0 = smov [#allocation7]  }
  0x1d   :  { %v67_v2 = vld [vmem:[#allocation2] sm:$0xff]  ;;  %v68_v3 = vld [vmem:[#allocation2 + $0x8] sm:$0xff]  ;;  %s87_s21 = sshll.u32 %s177_s0, 4  ;;  %s88_s21 = int_to_ptr.vmem [resolvable:$true] %s87_s21 }
  0x1e   :  { %v69_v4 = vsub.f32 %v65_v0, %v67_v2  ;;  %v70_v5 = vsub.f32 %v66_v1, %v68_v3  ;;  %s147_s1 = scalar_lea.vmem %s88_s21, 128  ;;  %p152_p11 = scmp.lt.s32.totalorder %s88_s21, %s88_s21 }
  0x1f   :  { %p148_p10 = scmp.ne.s32.totalorder %s88_s21, %s147_s1  ;;  %p153_p12 = scmp.lt.s32.totalorder %s147_s1, %s147_s1 }
  0x20   :  { %v71_v6 = vmul.f32 0.5, %v69_v4  ;;  %v73_v7 = vmul.f32 -0.5, %v69_v4  ;;  %v72_v8 = vmul.f32 0.5, %v70_v5  ;;  %v74_v9 = vmul.f32 -0.5, %v70_v5 }
  0x21   :  { %p154_p13 = por %p153_p12, %p152_p11 }
  0x22   :  { %v75_v10 = vmax.f32 %v71_v6, %v73_v7  ;;  %v76_v11 = vmax.f32 %v72_v8, %v74_v9 }
  0x23   :  { %p155_p0 = pnand %p154_p13, %p148_p10 }
  0x24   :  { %v78_v12 = vadd.f32 %v76_v11, %v75_v10 }
  0x26   :  { %80 = vst [vmem:[#allocation7] sm:$0xff] %v78_v12 }
  0x27   :  { %158 = shalt.err (!%p155_p0)
}
  0x28   :  { %90 = dma.vmem_to_hbm [thread:$0]  %s88_s21, 128, %s204_s2, [#allocation4]  }
  0x29   :  { %171 = dma.done.wait [#allocation4], 128  }
  0x2a   :  { %172 = vsyncadd [#allocation4], 4294967168 }
  0x2b   :  { %94 = vsyncpa [#allocation3], 1 }
  0x2c   :  { %95 = vsyncpa [#allocation6], 1 }
  0x2d   :  { %96 = vsyncpa [#allocation4], 1 }

</bundles_post_ra>
